<compile_context>
chip_gen: v5e
topology: v5e:2x2
jax: 0.10.0
libtpu: 0.0.40
codegen_flags: <defaults>
</compile_context>

<pallas_src>
import functools
import math

import jax
import jax.numpy as jnp
from jax.experimental import pallas as pl
from jax.experimental.pallas import tpu as pltpu


def _round_up(x: int, m: int) -> int:
    return ((x + m - 1) // m) * m


def _linear_kernel(x_ref, w_ref, o_ref):
    """Compute one (tm, tn) output tile; reduction runs over grid axis 2 (K).

    x_ref : (tm, tk) tile of the (M, K) input.
    w_ref : (tn, tk) tile of the (N, K) weight (NOT transposed on the host).
    o_ref : (tm, tn) f32 output tile. Its index_map is k-invariant, so it stays
            VMEM-resident across the K axis and we accumulate into it directly.
    """
    @pl.when(pl.program_id(2) == 0)
    def _():
        o_ref[...] = jnp.zeros_like(o_ref)

    # Contract the last dim of both tiles: (tm, tk) x (tn, tk) -> (tm, tn).
    # Lowers to the same MXU op as a pre-transposed matmul, without the extra
    # HBM transpose of the weight.
    o_ref[...] += jax.lax.dot_general(
        x_ref[...],
        w_ref[...],
        dimension_numbers=(((1,), (1,)), ((), ())),
        preferred_element_type=jnp.float32,
    )


@functools.partial(
    jax.jit,
    static_argnames=("tm", "tn", "tk", "use_bf16", "weight_buffer_count"),
)
def my_linear_forward(
    x,
    weight,
    *,
    tm=None,
    tn=None,
    tk=None,
    use_bf16=False,
    weight_buffer_count=2,
):
    """Pallas implementation of My_linear.forward: x @ weight.T (no bias)."""
    M, K = x.shape
    N, Kw = weight.shape
    if K != Kw:
        raise ValueError(f"in_features mismatch: {K} vs {Kw}")

    # ---- Tile selection -----------------------------------------------------
    # Defaults sized for VMEM (double-buffered footprint ~3 MiB at f32), then
    # clamped to the (padded) problem and aligned to the (8, 128) vreg tile so
    # output stores are lane-dense (tn multiple of 128, tm multiple of 8).
    tm = tm if tm is not None else 256
    tn = tn if tn is not None else 256
    tk = tk if tk is not None else 512
    tm = _round_up(min(tm, M), 8)
    tn = _round_up(min(tn, N), 128)
    tk = _round_up(min(tk, K), 128)

    # Pad the problem up to tile multiples (zeros are exact for a matmul),
    # then slice the result back. Avoids divisibility asserts / awkward tiles.
    Mp = _round_up(M, tm)
    Np = _round_up(N, tn)
    Kp = _round_up(K, tk)

    compute_dtype = jnp.bfloat16 if use_bf16 else x.dtype
    xp = x.astype(compute_dtype)
    wp = weight.astype(compute_dtype)
    if (Mp, Kp) != (M, K):
        xp = jnp.pad(xp, ((0, Mp - M), (0, Kp - K)))
    if (Np, Kp) != (N, K):
        wp = jnp.pad(wp, ((0, Np - N), (0, Kp - K)))

    grid = (Mp // tm, Np // tn, Kp // tk)

    # ---- VMEM budget ---------------------------------------------------------
    # Double-buffered inputs + resident output tile, plus compiler headroom.
    # Capped at 48 MiB so the same code is safe on v7x (64 MiB/TC) as well as
    # v5e/v6e (128 MiB).
    in_bytes = jnp.dtype(compute_dtype).itemsize
    per_step = 2 * (tm * tk + tn * tk) * in_bytes + 2 * tm * tn * 4
    vmem_limit = int(min(max(4 * per_step, 32 * 1024 * 1024), 48 * 1024 * 1024))

    # Optional deeper buffering on the weight stream (useful on v5e if the DMA
    # is exposed); default (2) uses the standard double-buffer path.
    if weight_buffer_count != 2:
        w_spec = pl.BlockSpec(
            (tn, tk),
            lambda i, j, k: (j, k),
            pipeline_mode=pl.Buffered(weight_buffer_count),
        )
    else:
        w_spec = pl.BlockSpec((tn, tk), lambda i, j, k: (j, k))

    out = pl.pallas_call(
        _linear_kernel,
        out_shape=jax.ShapeDtypeStruct((Mp, Np), jnp.float32),
        grid_spec=pltpu.PrefetchScalarGridSpec(
            num_scalar_prefetch=0,
            grid=grid,
            in_specs=[
                pl.BlockSpec((tm, tk), lambda i, j, k: (i, k)),
                w_spec,
            ],
            out_specs=pl.BlockSpec((tm, tn), lambda i, j, k: (i, j)),
        ),
        compiler_params=pltpu.CompilerParams(
            dimension_semantics=("parallel", "parallel", "arbitrary"),
            vmem_limit_bytes=vmem_limit,
        ),
    )(xp, wp)

    if (Mp, Np) != (M, N):
        out = out[:M, :N]
    return out.astype(x.dtype)


def init_my_linear_params(key, in_features, out_features):
    """Deterministic init matching My_linear.__init__ / reset_parameters."""
    k_w, k_b = jax.random.split(key)
    bound = 1.0 / math.sqrt(out_features)  # bound uses weight.size(0) == out_features
    weight = jax.random.uniform(
        k_w, (out_features, in_features), minval=-bound, maxval=bound,
        dtype=jnp.float32,
    )
    # bias is a parameter of the module but is unused in forward().
    bias = jax.random.normal(k_b, (out_features,), dtype=jnp.float32)
    return weight, bias


if __name__ == "__main__":
    key = jax.random.PRNGKey(0)
    k_x, k_p, k_x2, k_w2 = jax.random.split(key, 4)

    # Small shape consistent with the module: (batch, in_features) -> (batch, out_features).
    batch, in_features, out_features = 8, 32, 16
    x = jax.random.normal(k_x, (batch, in_features), dtype=jnp.float32)
    weight, bias = init_my_linear_params(k_p, in_features, out_features)

    out = jax.block_until_ready(my_linear_forward(x, weight))
    ref = x @ weight.T
    assert out.shape == (batch, out_features)
    assert jnp.allclose(out, ref, atol=1e-5, rtol=1e-5)

    # Non-tile-aligned shape to exercise padding + the multi-tile pipelined grid.
    M2, K2, N2 = 300, 384, 272
    x2 = jax.random.normal(k_x2, (M2, K2), dtype=jnp.float32)
    w2 = jax.random.normal(k_w2, (N2, K2), dtype=jnp.float32) * (1.0 / math.sqrt(N2))
    out2 = jax.block_until_ready(my_linear_forward(x2, w2))
    ref2 = x2 @ w2.T
    assert out2.shape == (M2, N2)
    assert jnp.allclose(out2, ref2, atol=1e-3, rtol=1e-3)

    print("KERNEL_OK")
</pallas_src>

<mosaic_0001>
module attributes {stable_mosaic.version = 11 : i64} {
  func.func @_linear_kernel(%arg0: i32, %arg1: i32, %arg2: i32, %arg3: memref<8x128xf32, #tpu.memory_space<vmem>>, %arg4: memref<128x128xf32, #tpu.memory_space<vmem>>, %arg5: memref<8x128xf32, #tpu.memory_space<vmem>>) attributes {dimension_semantics = [#tpu.dimension_semantics<parallel>, #tpu.dimension_semantics<parallel>, #tpu.dimension_semantics<arbitrary>], iteration_bounds = array<i64: 1, 1, 1>, scalar_prefetch = 0 : i64, scratch_operands = 0 : i64, tpu.core_type = #tpu.core_type<tc>, window_params = [{transform_indices = @transform_0, window_bounds = array<i64: 8, 128>}, {transform_indices = @transform_1, window_bounds = array<i64: 128, 128>}, {transform_indices = @transform_2, window_bounds = array<i64: 8, 128>}]} {
    %c0_i32 = arith.constant 0 : i32
    %0 = arith.cmpi eq, %arg2, %c0_i32 : i32
    %1 = arith.extui %0 : i1 to i32
    %c0_i32_0 = arith.constant 0 : i32
    %2 = arith.cmpi ne, %1, %c0_i32_0 : i32
    scf.if %2 {
      %cst_8 = arith.constant 0.000000e+00 : f32
      %9 = vector.broadcast %cst_8 : f32 to vector<8x128xf32>
      %c0_9 = arith.constant 0 : index
      %c0_10 = arith.constant 0 : index
      %10 = vector.load %arg5[%c0_9, %c0_10] : memref<8x128xf32, #tpu.memory_space<vmem>>, vector<8x128xf32>
      tpu.vector_store %arg5[%c0_9, %c0_10], %9 {strides = array<i32>} : memref<8x128xf32, #tpu.memory_space<vmem>>, vector<8x128xf32>,
    } else {
    }
    %c0 = arith.constant 0 : index
    %c0_1 = arith.constant 0 : index
    %3 = vector.load %arg5[%c0, %c0_1] : memref<8x128xf32, #tpu.memory_space<vmem>>, vector<8x128xf32>
    %c0_2 = arith.constant 0 : index
    %c0_3 = arith.constant 0 : index
    %4 = vector.load %arg3[%c0_2, %c0_3] : memref<8x128xf32, #tpu.memory_space<vmem>>, vector<8x128xf32>
    %c0_4 = arith.constant 0 : index
    %c0_5 = arith.constant 0 : index
    %5 = vector.load %arg4[%c0_4, %c0_5] : memref<128x128xf32, #tpu.memory_space<vmem>>, vector<128x128xf32>
    %cst = arith.constant dense<0.000000e+00> : vector<8x128xf32>
    %6 = tpu.matmul %4, %5, %cst {dimension_numbers = #tpu.dot_dimension_numbers<[1], [1], [0], [0], [0, 0, 1, 0], [], []>} : vector<8x128xf32>, vector<128x128xf32>, vector<8x128xf32> -> vector<8x128xf32>
    %7 = arith.addf %3, %6 : vector<8x128xf32>
    %c0_6 = arith.constant 0 : index
    %c0_7 = arith.constant 0 : index
    %8 = vector.load %arg5[%c0_6, %c0_7] : memref<8x128xf32, #tpu.memory_space<vmem>>, vector<8x128xf32>
    tpu.vector_store %arg5[%c0_6, %c0_7], %7 {strides = array<i32>} : memref<8x128xf32, #tpu.memory_space<vmem>>, vector<8x128xf32>,
    return
  }
  func.func @transform_0(%arg0: i32, %arg1: i32, %arg2: i32) -> (i32, i32) {
    %c0_i32 = arith.constant 0 : i32
    return %arg0, %arg2 : i32, i32
  }
  func.func @transform_1(%arg0: i32, %arg1: i32, %arg2: i32) -> (i32, i32) {
    %c0_i32 = arith.constant 0 : i32
    return %arg1, %arg2 : i32, i32
  }
  func.func @transform_2(%arg0: i32, %arg1: i32, %arg2: i32) -> (i32, i32) {
    %c0_i32 = arith.constant 0 : i32
    return %arg0, %arg1 : i32, i32
  }
}

</mosaic_0001>

<bundles_post_ra>
// kernel: my_linear_forward.1
= control target key start
LH: loop header
LB: loop body
LE: loop exit
PB: predicated region body
PF: predicated region fallthrough
CT: control target
= control target key end

     0   :  { %s171_s0 = inlined_call_operand.vmem [shape: f32[8,128], index: 0, kind: input, shape index: {}]   ;;  %s172_s1 = inlined_call_operand.vmem [shape: f32[128,128], index: 1, kind: input, shape index: {}]   ;;  %s173_s2 = inlined_call_operand.hbm [shape: f32[8,128], index: 2, kind: output, shape index: {}]  }
   0x1   :  { %v34_v0 = vld [vmem:[%s172_s1 + $0x78] sm:$0xff]  ;;  %v33_v1 = vld [vmem:[%s172_s1 + $0x70] sm:$0xff] }
   0x2   :  { %35 = vmatpush.xpose.msra.mxu0 %v34_v0 }
   0x3   :  { %7 = vsyncpa [#allocation3], 0  ;;  %v32_v2 = vld [vmem:[%s172_s1 + $0x68] sm:$0xff]  ;;  %v31_v3 = vld [vmem:[%s172_s1 + $0x60] sm:$0xff]  ;;  %s101_s15 = smov [#allocation2]   ;;  %s64_s19 = sshll.u32 %s173_s2, 4  ;;  %s65_s19 = int_to_ptr.hbm [resolvable:$true] %s64_s19 }
   0x4   :  { %v30_v4 = vld [vmem:[%s172_s1 + $0x58] sm:$0xff]  ;;  %v29_v5 = vld [vmem:[%s172_s1 + $0x50] sm:$0xff]  ;;  %v28_v6 = vld [vmem:[%s172_s1 + $0x48] sm:$0xff]  ;;  %s62_s16 = sshll.u32 %s101_s15, 4  ;;  %s63_s16 = int_to_ptr.vmem [resolvable:$true] %s62_s16 }
   0x5   :  { %v27_v7 = vld [vmem:[%s172_s1 + $0x40] sm:$0xff]  ;;  %v26_v8 = vld [vmem:[%s172_s1 + $0x38] sm:$0xff]  ;;  %v25_v9 = vld [vmem:[%s172_s1 + $0x30] sm:$0xff] }
   0x6   :  { %36 = vmatpush.xpose.msra.mxu0 %v33_v1  ;;  %v24_v10 = vld [vmem:[%s172_s1 + $0x28] sm:$0xff]  ;;  %v23_v11 = vld [vmem:[%s172_s1 + $0x20] sm:$0xff]  ;;  %v22_v12 = vld [vmem:[%s172_s1 + $0x18] sm:$0xff] }
   0x7   :  { %v21_v13 = vld [vmem:[%s172_s1 + $0x10] sm:$0xff]  ;;  %v20_v14 = vld [vmem:[%s172_s1 + $0x8] sm:$0xff]  ;;  %v19_v15 = vld [vmem:[%s172_s1] sm:$0xff] }
   0x8   :  { %v18_v16 = vld [vmem:[%s171_s0] sm:$0xff] }
   0xa   :  { %37 = vmatpush.xpose.msra.mxu0 %v32_v2 }
   0xe   :  { %38 = vmatpush.xpose.msra.mxu0 %v31_v3 }
  0x12   :  { %39 = vmatpush.xpose.msra.mxu0 %v30_v4 }
  0x16   :  { %40 = vmatpush.xpose.msra.mxu0 %v29_v5 }
  0x1a   :  { %41 = vmatpush.xpose.msra.mxu0 %v28_v6 }
  0x1e   :  { %42 = vmatpush.xpose.msra.mxu0 %v27_v7 }
  0x22   :  { %43 = vmatpush.xpose.msra.mxu0 %v26_v8 }
  0x26   :  { %44 = vmatpush.xpose.msra.mxu0 %v25_v9 }
  0x2a   :  { %45 = vmatpush.xpose.msra.mxu0 %v24_v10 }
  0x2e   :  { %46 = vmatpush.xpose.msra.mxu0 %v23_v11 }
  0x32   :  { %47 = vmatpush.xpose.msra.mxu0 %v22_v12 }
  0x36   :  { %48 = vmatpush.xpose.msra.mxu0 %v21_v13 }
  0x3a   :  { %49 = vmatpush.xpose.msra.mxu0 %v20_v14 }
  0x3e   :  { %50 = vmatpush.xpose.msra.mxu0 %v19_v15 }
  0x41   :  { %51 = vmatmul.f32.vlgmr.msra.gmra.mxu0 %v18_v16 }
  0xbe   :  { %v52_v17 = vpop.f32.mrf.mxu0 }
  0xbf   :  { %56 = vst [vmem:[#allocation2] sm:$0xff] %v52_v17 }
  0xc0   :  { %67 = dma.vmem_to_hbm [thread:$0]  %s63_s16, 128, %s65_s19, [#allocation3]  }
  0xc1   :  { %99 = dma.done.wait [#allocation3], 128  }
  0xc2   :  { %100 = vsyncadd [#allocation3], 4294967168 }
  0xc3   :  { %72 = vsyncpa [#allocation3], 1 }

</bundles_post_ra>
